<compile_context>
chip_gen: v5e
topology: v5e:2x2
jax: 0.10.0
libtpu: 0.0.40
codegen_flags: <defaults>
</compile_context>

<pallas_src>
import functools

import jax
import jax.numpy as jnp
from jax.experimental import pallas as pl
from jax.experimental.pallas import tpu as pltpu

IN_DIM = 128
HID_DIM = 256
OUT_DIM = 28 * 28  # 784


def _round_up(n, m):
    return ((n + m - 1) // m) * m


def _device_kind():
    try:
        return jax.devices()[0].device_kind.lower()
    except Exception:
        return ""


def _decoder_kernel(x_ref, w1_ref, b1_ref, w2_ref, b2_ref, o_ref, *, bf16_tanh):
    # x_ref:  (TM, 128) f32     w1_ref: (128, 256) bf16   b1_ref: (1, 256) f32
    # w2_ref: (256, 784) bf16   b2_ref: (1, 784)  f32     o_ref:  (TM, 784) out dtype
    x = x_ref[...].astype(jnp.bfloat16)

    # Linear 1 (bf16 MXU operands, f32 accumulation) + bias + ReLU
    h = jnp.dot(x, w1_ref[...], preferred_element_type=jnp.float32) + b1_ref[...]
    h = jnp.maximum(h, 0.0).astype(jnp.bfloat16)

    # Linear 2 + bias + Tanh
    y = jnp.dot(h, w2_ref[...], preferred_element_type=jnp.float32) + b2_ref[...]
    if bf16_tanh:
        # bf16 EUP path (v6e/v7x); only used when the output itself is bf16.
        y = y.astype(jnp.bfloat16)
    o_ref[...] = jnp.tanh(y).astype(o_ref.dtype)


def decoder_forward(x, w1, b1, w2, b2, *, tm=None, out_dtype=jnp.float32):
    """x: (B, 128) float32 -> (B, 1, 28, 28) in `out_dtype` (f32 by default)."""
    B = x.shape[0]
    kind = _device_kind()
    is_v5 = "v5" in kind
    is_v7 = ("v7" in kind) or ("7x" in kind)

    if tm is None:
        tm = 512 if is_v7 else 1024
    # Cap so double-buffered x/out tiles + f32 intermediates stay inside the
    # 32 MiB scoped-VMEM budget on every generation (incl. v7x's 64 MiB VMEM).
    tm = min(tm, 1024)

    # Batch tile: multiple of 8 (sublane). For B >= 16 split into >= 2 tiles so
    # both v7x TensorCores get a grid step (harmless on 1-TC chips).
    if B >= 16:
        TM = min(tm, _round_up(pl.cdiv(B, 2), 8))
    else:
        TM = _round_up(max(B, 1), 8)
    grid = pl.cdiv(B, TM)  # ragged last block is masked by Pallas: no HBM pad/slice

    bf16_tanh = (jnp.dtype(out_dtype) == jnp.dtype(jnp.bfloat16)) and not is_v5

    flat = pl.pallas_call(
        functools.partial(_decoder_kernel, bf16_tanh=bf16_tanh),
        out_shape=jax.ShapeDtypeStruct((B, OUT_DIM), out_dtype),
        grid_spec=pl.GridSpec(
            grid=(grid,),
            in_specs=[
                pl.BlockSpec((TM, IN_DIM), lambda i: (i, 0)),        # streamed
                pl.BlockSpec((IN_DIM, HID_DIM), lambda i: (0, 0)),   # resident
                pl.BlockSpec((1, HID_DIM), lambda i: (0, 0)),        # resident
                pl.BlockSpec((HID_DIM, OUT_DIM), lambda i: (0, 0)),  # resident
                pl.BlockSpec((1, OUT_DIM), lambda i: (0, 0)),        # resident
            ],
            out_specs=pl.BlockSpec((TM, OUT_DIM), lambda i: (i, 0)),
        ),
        compiler_params=pltpu.CompilerParams(
            dimension_semantics=("parallel",),  # megacore sharding on v7x
            vmem_limit_bytes=32 * 1024 * 1024,
        ),
    )(x, w1, b1, w2, b2)

    # glue: PyTorch's x.view(B, 1, 28, 28) — pure metadata reshape, no HBM copy.
    return flat.reshape(B, 1, 28, 28)


def init_params(key):
    """Deterministic synthetic params with nn.Linear-like uniform init.

    Weights are stored pre-transposed (in, out) and in bf16 (MXU-native);
    biases stay f32.
    """
    k1, k2, k3, k4 = jax.random.split(key, 4)
    lim1 = 1.0 / jnp.sqrt(IN_DIM)
    lim2 = 1.0 / jnp.sqrt(HID_DIM)
    w1 = jax.random.uniform(k1, (IN_DIM, HID_DIM), jnp.float32, -lim1, lim1)
    b1 = jax.random.uniform(k2, (1, HID_DIM), jnp.float32, -lim1, lim1)
    w2 = jax.random.uniform(k3, (HID_DIM, OUT_DIM), jnp.float32, -lim2, lim2)
    b2 = jax.random.uniform(k4, (1, OUT_DIM), jnp.float32, -lim2, lim2)
    return w1.astype(jnp.bfloat16), b1, w2.astype(jnp.bfloat16), b2


def _reference(x, w1, b1, w2, b2):
    """Pure-JAX reference following the same bf16-operand / f32-accum recipe."""
    h = jnp.dot(x.astype(jnp.bfloat16), w1, preferred_element_type=jnp.float32) + b1
    h = jnp.maximum(h, 0.0).astype(jnp.bfloat16)
    y = jnp.dot(h, w2, preferred_element_type=jnp.float32) + b2
    return jnp.tanh(y).reshape(x.shape[0], 1, 28, 28)


if __name__ == "__main__":
    key = jax.random.PRNGKey(0)
    kx, kp, kx2, kx3 = jax.random.split(key, 4)
    w1, b1, w2, b2 = init_params(kp)

    # Small batch (single grid step).
    B = 8
    x = jax.random.normal(kx, (B, IN_DIM), jnp.float32)
    out = jax.block_until_ready(decoder_forward(x, w1, b1, w2, b2))
    assert out.shape == (B, 1, 28, 28), out.shape
    assert out.dtype == jnp.float32
    assert bool(jnp.all(jnp.abs(out) <= 1.0 + 1e-6))
    ref = _reference(x, w1, b1, w2, b2)
    assert bool(jnp.allclose(out, ref, atol=2e-2, rtol=2e-2))

    # Larger, non-divisible batch: exercises the cdiv grid + ragged last block.
    B2 = 300
    x2 = jax.random.normal(kx2, (B2, IN_DIM), jnp.float32)
    out2 = jax.block_until_ready(decoder_forward(x2, w1, b1, w2, b2))
    assert out2.shape == (B2, 1, 28, 28), out2.shape
    ref2 = _reference(x2, w1, b1, w2, b2)
    assert bool(jnp.allclose(out2, ref2, atol=2e-2, rtol=2e-2))

    # Optional bf16-output path (halves the dominant HBM write stream).
    B3 = 64
    x3 = jax.random.normal(kx3, (B3, IN_DIM), jnp.float32)
    out3 = jax.block_until_ready(
        decoder_forward(x3, w1, b1, w2, b2, out_dtype=jnp.bfloat16))
    assert out3.shape == (B3, 1, 28, 28), out3.shape
    assert out3.dtype == jnp.bfloat16
    ref3 = _reference(x3, w1, b1, w2, b2)
    assert bool(jnp.allclose(out3.astype(jnp.float32), ref3, atol=2e-2, rtol=2e-2))

    print("KERNEL_OK")
</pallas_src>

<mosaic_0001>
module attributes {stable_mosaic.version = 11 : i64} {
  func.func @_decoder_kernel(%arg0: i32, %arg1: memref<8x128xf32, #tpu.memory_space<vmem>>, %arg2: memref<128x256xbf16, #tpu.memory_space<vmem>>, %arg3: memref<1x256xf32, #tpu.memory_space<vmem>>, %arg4: memref<256x784xbf16, #tpu.memory_space<vmem>>, %arg5: memref<1x784xf32, #tpu.memory_space<vmem>>, %arg6: memref<8x784xf32, #tpu.memory_space<vmem>>) attributes {dimension_semantics = [#tpu.dimension_semantics<parallel>], iteration_bounds = array<i64: 1>, scalar_prefetch = 0 : i64, scratch_operands = 0 : i64, tpu.core_type = #tpu.core_type<tc>, window_params = [{transform_indices = @transform_0, window_bounds = array<i64: 8, 128>}, {pipeline_mode = #tpu.pipeline_mode<synchronous>, transform_indices = @transform_1, window_bounds = array<i64: 128, 256>}, {pipeline_mode = #tpu.pipeline_mode<synchronous>, transform_indices = @transform_2, window_bounds = array<i64: 1, 256>}, {pipeline_mode = #tpu.pipeline_mode<synchronous>, transform_indices = @transform_3, window_bounds = array<i64: 256, 784>}, {pipeline_mode = #tpu.pipeline_mode<synchronous>, transform_indices = @transform_4, window_bounds = array<i64: 1, 784>}, {transform_indices = @transform_5, window_bounds = array<i64: 8, 784>}]} {
    %c0 = arith.constant 0 : index
    %c0_0 = arith.constant 0 : index
    %0 = vector.load %arg1[%c0, %c0_0] : memref<8x128xf32, #tpu.memory_space<vmem>>, vector<8x128xf32>
    %1 = arith.truncf %0 : vector<8x128xf32> to vector<8x128xbf16>
    %c0_1 = arith.constant 0 : index
    %c0_2 = arith.constant 0 : index
    %2 = vector.load %arg2[%c0_1, %c0_2] : memref<128x256xbf16, #tpu.memory_space<vmem>>, vector<128x256xbf16>
    %cst = arith.constant dense<0.000000e+00> : vector<8x256xf32>
    %3 = tpu.matmul %1, %2, %cst {dimension_numbers = #tpu.dot_dimension_numbers<[1], [0], [0], [1], [0, 0, 1, 1], [], []>} : vector<8x128xbf16>, vector<128x256xbf16>, vector<8x256xf32> -> vector<8x256xf32>
    %c0_3 = arith.constant 0 : index
    %c0_4 = arith.constant 0 : index
    %4 = vector.load %arg3[%c0_3, %c0_4] : memref<1x256xf32, #tpu.memory_space<vmem>>, vector<1x256xf32>
    %5 = vector.broadcast %4 : vector<1x256xf32> to vector<8x256xf32>
    %6 = arith.addf %3, %5 : vector<8x256xf32>
    %cst_5 = arith.constant 0.000000e+00 : f32
    %7 = vector.broadcast %cst_5 : f32 to vector<8x256xf32>
    %8 = arith.maximumf %6, %7 : vector<8x256xf32>
    %9 = arith.truncf %8 : vector<8x256xf32> to vector<8x256xbf16>
    %c0_6 = arith.constant 0 : index
    %c0_7 = arith.constant 0 : index
    %10 = vector.load %arg4[%c0_6, %c0_7] : memref<256x784xbf16, #tpu.memory_space<vmem>>, vector<256x784xbf16>
    %cst_8 = arith.constant dense<0.000000e+00> : vector<8x784xf32>
    %11 = tpu.matmul %9, %10, %cst_8 {dimension_numbers = #tpu.dot_dimension_numbers<[1], [0], [0], [1], [0, 0, 1, 1], [], []>} : vector<8x256xbf16>, vector<256x784xbf16>, vector<8x784xf32> -> vector<8x784xf32>
    %c0_9 = arith.constant 0 : index
    %c0_10 = arith.constant 0 : index
    %12 = vector.load %arg5[%c0_9, %c0_10] : memref<1x784xf32, #tpu.memory_space<vmem>>, vector<1x784xf32>
    %13 = vector.broadcast %12 : vector<1x784xf32> to vector<8x784xf32>
    %14 = arith.addf %11, %13 : vector<8x784xf32>
    %15 = math.tanh %14 : vector<8x784xf32>
    %c0_11 = arith.constant 0 : index
    %c0_12 = arith.constant 0 : index
    %16 = vector.load %arg6[%c0_11, %c0_12] : memref<8x784xf32, #tpu.memory_space<vmem>>, vector<8x784xf32>
    tpu.vector_store %arg6[%c0_11, %c0_12], %15 {strides = array<i32>} : memref<8x784xf32, #tpu.memory_space<vmem>>, vector<8x784xf32>,
    return
  }
  func.func @transform_0(%arg0: i32) -> (i32, i32) {
    %c0_i32 = arith.constant 0 : i32
    %c0_i32_0 = arith.constant 0 : i32
    return %arg0, %c0_i32 : i32, i32
  }
  func.func @transform_1(%arg0: i32) -> (i32, i32) {
    %c0_i32 = arith.constant 0 : i32
    %c0_i32_0 = arith.constant 0 : i32
    %c0_i32_1 = arith.constant 0 : i32
    return %c0_i32, %c0_i32_0 : i32, i32
  }
  func.func @transform_2(%arg0: i32) -> (i32, i32) {
    %c0_i32 = arith.constant 0 : i32
    %c0_i32_0 = arith.constant 0 : i32
    %c0_i32_1 = arith.constant 0 : i32
    return %c0_i32, %c0_i32_0 : i32, i32
  }
  func.func @transform_3(%arg0: i32) -> (i32, i32) {
    %c0_i32 = arith.constant 0 : i32
    %c0_i32_0 = arith.constant 0 : i32
    %c0_i32_1 = arith.constant 0 : i32
    return %c0_i32, %c0_i32_0 : i32, i32
  }
  func.func @transform_4(%arg0: i32) -> (i32, i32) {
    %c0_i32 = arith.constant 0 : i32
    %c0_i32_0 = arith.constant 0 : i32
    %c0_i32_1 = arith.constant 0 : i32
    return %c0_i32, %c0_i32_0 : i32, i32
  }
  func.func @transform_5(%arg0: i32) -> (i32, i32) {
    %c0_i32 = arith.constant 0 : i32
    %c0_i32_0 = arith.constant 0 : i32
    return %arg0, %c0_i32 : i32, i32
  }
}

</mosaic_0001>

<bundles_post_ra>
// kernel: tpu_custom_call.1
= control target key start
LH: loop header
LB: loop body
LE: loop exit
PB: predicated region body
PF: predicated region fallthrough
CT: control target
= control target key end

     0   :  { %s2607_s0 = inlined_call_operand.vmem [shape: f32[8,128], index: 0, kind: input, shape index: {}]   ;;  %s2608_s1 = inlined_call_operand.vmem [shape: bf16[128,256], index: 1, kind: input, shape index: {}]   ;;  %s2609_s2 = inlined_call_operand.vmem [shape: f32[1,256], index: 2, kind: input, shape index: {}]   ;;  %s2610_s3 = inlined_call_operand.vmem [shape: bf16[256,784], index: 3, kind: input, shape index: {}]   ;;  %s2611_s4 = inlined_call_operand.vmem [shape: f32[1,784], index: 4, kind: input, shape index: {}]   ;;  %s2612_s5 = inlined_call_operand.hbm [shape: f32[8,784], index: 5, kind: output, shape index: {}]  }
   0x1   :  { %v1146_v0 = vld [vmem:[%s2608_s1 + $0x70] sm:$0xf]  ;;  %v1615_v1 = vld [vmem:[%s2608_s1 + $0x74] sm:$0xf0]  ;;  %v1614_v2 = vld [vmem:[%s2608_s1 + $0x74] sm:$0xf] }
   0x2   :  { %v1147_v3 = vor.u32 %v1615_v1, %v1146_v0  ;;  %v1148_v4 = vld [vmem:[%s2608_s1 + $0x78] sm:$0xf0]  ;;  %v1138_v5 = vld [vmem:[%s2608_s1 + $0x60] sm:$0xf]  ;;  %v1613_v6 = vld [vmem:[%s2608_s1 + $0x64] sm:$0xf0] }
   0x3   :  { %v1151_v7 = vor.u32 %v1614_v2, %v1148_v4  ;;  %v1612_v8 = vld [vmem:[%s2608_s1 + $0x64] sm:$0xf]  ;;  %v1140_v9 = vld [vmem:[%s2608_s1 + $0x68] sm:$0xf0]  ;;  %v1139_v10 = vor.u32 %v1613_v6, %v1138_v5  ;;  %v1130_v12 = vld [vmem:[%s2608_s1 + $0x50] sm:$0xf] }
   0x4   :  { %125 = vmatpush.bf16.msra.mxu0 %v1147_v3  ;;  %v1143_v11 = vor.u32 %v1612_v8, %v1140_v9  ;;  %v1611_v13 = vld [vmem:[%s2608_s1 + $0x54] sm:$0xf0]  ;;  %v1610_v14 = vld [vmem:[%s2608_s1 + $0x54] sm:$0xf]  ;;  %v1132_v15 = vld [vmem:[%s2608_s1 + $0x58] sm:$0xf0] }
   0x5   :  { %138 = vmatpush.bf16.msra.mxu1 %v1151_v7  ;;  %v1131_v16 = vor.u32 %v1611_v13, %v1130_v12  ;;  %v1135_v17 = vor.u32 %v1610_v14, %v1132_v15  ;;  %v1122_v18 = vld [vmem:[%s2608_s1 + $0x40] sm:$0xf]  ;;  %v1609_v19 = vld [vmem:[%s2608_s1 + $0x44] sm:$0xf0]  ;;  %v1608_v20 = vld [vmem:[%s2608_s1 + $0x44] sm:$0xf] }
   0x6   :  { %v1124_v21 = vld [vmem:[%s2608_s1 + $0x48] sm:$0xf0]  ;;  %v1123_v22 = vor.u32 %v1609_v19, %v1122_v18  ;;  %v1350_v23 = vld [vmem:[%s2610_s3 + $0x188] sm:$0xf]  ;;  %v1668_v24 = vld [vmem:[%s2610_s3 + $0x1a0] sm:$0xf0] }
   0x7   :  { %v1574_v25 = vld [vmem:[%s2610_s3 + $0x348] sm:$0xf]  ;;  %v1127_v26 = vor.u32 %v1608_v20, %v1124_v21  ;;  %v1114_v27 = vld [vmem:[%s2608_s1 + $0x30] sm:$0xf]  ;;  %v1607_v28 = vld [vmem:[%s2608_s1 + $0x34] sm:$0xf0]  ;;  %v1351_v29 = vor.u32 %v1668_v24, %v1350_v23 }
   0x8   :  { %126 = vmatpush.bf16.msra.mxu0 %v1139_v10  ;;  %v1724_v30 = vld [vmem:[%s2610_s3 + $0x360] sm:$0xf0]  ;;  %v1606_v31 = vld [vmem:[%s2608_s1 + $0x34] sm:$0xf]  ;;  %v1116_v32 = vld [vmem:[%s2608_s1 + $0x38] sm:$0xf0]  ;;  %v1115_v38 = vor.u32 %v1607_v28, %v1114_v27 }
   0x9   :  { %139 = vmatpush.bf16.msra.mxu1 %v1143_v11  ;;  %v1575_v33 = vor.u32 %v1724_v30, %v1574_v25  ;;  %v1322_v34 = vld [vmem:[%s2610_s3 + $0x150] sm:$0xf]  ;;  %875 = vmatpush.bf16.msra.mxu2 %v1351_v29  ;;  %v1661_v35 = vld [vmem:[%s2610_s3 + $0x168] sm:$0xf0]  ;;  %v1106_v39 = vld [vmem:[%s2608_s1 + $0x20] sm:$0xf]  ;;  %v1119_v43 = vor.u32 %v1606_v31, %v1116_v32 }
   0xa   :  { %v1546_v36 = vld [vmem:[%s2610_s3 + $0x310] sm:$0xf]  ;;  %v1717_v37 = vld [vmem:[%s2610_s3 + $0x328] sm:$0xf0]  ;;  %v1605_v40 = vld [vmem:[%s2608_s1 + $0x24] sm:$0xf0]  ;;  %v1323_v41 = vor.u32 %v1661_v35, %v1322_v34 }
   0xb   :  { %888 = vmatpush.bf16.msra.mxu3 %v1575_v33  ;;  %v1547_v42 = vor.u32 %v1717_v37, %v1546_v36  ;;  %v1604_v44 = vld [vmem:[%s2608_s1 + $0x24] sm:$0xf]  ;;  %v1294_v45 = vld [vmem:[%s2610_s3 + $0x118] sm:$0xf]  ;;  %v1654_v46 = vld [vmem:[%s2610_s3 + $0x130] sm:$0xf0]  ;;  %v1107_v51 = vor.u32 %v1605_v40, %v1106_v39 }
   0xc   :  { %127 = vmatpush.bf16.msra.mxu0 %v1131_v16  ;;  %v1108_v47 = vld [vmem:[%s2608_s1 + $0x28] sm:$0xf0]  ;;  %v1518_v48 = vld [vmem:[%s2610_s3 + $0x2d8] sm:$0xf]  ;;  %v1710_v49 = vld [vmem:[%s2610_s3 + $0x2f0] sm:$0xf0]  ;;  %v1295_v50 = vor.u32 %v1654_v46, %v1294_v45 }
   0xd   :  { %140 = vmatpush.bf16.msra.mxu1 %v1135_v17  ;;  %876 = vmatpush.bf16.msra.mxu2 %v1323_v41  ;;  %v1098_v52 = vld [vmem:[%s2608_s1 + $0x10] sm:$0xf]  ;;  %v1519_v53 = vor.u32 %v1710_v49, %v1518_v48  ;;  %v1266_v54 = vld [vmem:[%s2610_s3 + $0xe0] sm:$0xf]  ;;  %v1647_v55 = vld [vmem:[%s2610_s3 + $0xf8] sm:$0xf0]  ;;  %v1111_v56 = vor.u32 %v1604_v44, %v1108_v47 }
   0xe   :  { %v1603_v57 = vld [vmem:[%s2608_s1 + $0x14] sm:$0xf0]  ;;  %v1490_v58 = vld [vmem:[%s2610_s3 + $0x2a0] sm:$0xf]  ;;  %v1703_v59 = vld [vmem:[%s2610_s3 + $0x2b8] sm:$0xf0]  ;;  %v1267_v63 = vor.u32 %v1647_v55, %v1266_v54 }
   0xf   :  { %889 = vmatpush.bf16.msra.mxu3 %v1547_v42  ;;  %v1602_v60 = vld [vmem:[%s2608_s1 + $0x14] sm:$0xf]  ;;  %v1100_v61 = vld [vmem:[%s2608_s1 + $0x18] sm:$0xf0]  ;;  %v1090_v62 = vld [vmem:[%s2608_s1] sm:$0xf]  ;;  %v1099_v0 = vor.u32 %v1603_v57, %v1098_v52  ;;  %v1491_v2 = vor.u32 %v1703_v59, %v1490_v58 }
  0x10   :  { %128 = vmatpush.bf16.msra.mxu0 %v1123_v22  ;;  %v1601_v1 = vld [vmem:[%s2608_s1 + $0x4] sm:$0xf0]  ;;  %v1640_v4 = vld [vmem:[%s2610_s3 + $0xc0] sm:$0xf0]  ;;  %v1103_v5 = vor.u32 %v1602_v60, %v1100_v61  ;;  %v1092_v9 = vld [vmem:[%s2608_s1 + $0x8] sm:$0xf0] }
  0x11   :  { %141 = vmatpush.bf16.msra.mxu1 %v1127_v26  ;;  %877 = vmatpush.bf16.msra.mxu2 %v1295_v50  ;;  %v1238_v3 = vld [vmem:[%s2610_s3 + $0xa8] sm:$0xf]  ;;  %v1600_v6 = vld [vmem:[%s2608_s1 + $0x4] sm:$0xf]  ;;  %v1665_v10 = vld [vmem:[%s2610_s3 + $0x18c] sm:$0xf]  ;;  %v1091_v15 = vor.u32 %v1601_v1, %v1090_v62 }
  0x12   :  { %v1462_v7 = vld [vmem:[%s2610_s3 + $0x268] sm:$0xf]  ;;  %v1696_v8 = vld [vmem:[%s2610_s3 + $0x280] sm:$0xf0]  ;;  %v1721_v12 = vld [vmem:[%s2610_s3 + $0x34c] sm:$0xf]  ;;  %v1239_v14 = vor.u32 %v1640_v4, %v1238_v3  ;;  %v1095_v20 = vor.u32 %v1600_v6, %v1092_v9 }
  0x13   :  { %890 = vmatpush.bf16.msra.mxu3 %v1519_v53  ;;  %v1352_v11 = vld [vmem:[%s2610_s3 + $0x1a4] sm:$0xf0]  ;;  %v21_v16 = vld [vmem:[%s2607_s0] sm:$0xff]  ;;  %v1463_v17 = vor.u32 %v1696_v8, %v1462_v7  ;;  %v1210_v18 = vld [vmem:[%s2610_s3 + $0x70] sm:$0xf] }
  0x14   :  { %129 = vmatpush.bf16.msra.mxu0 %v1115_v38  ;;  %v1576_v13 = vld [vmem:[%s2610_s3 + $0x364] sm:$0xf0]  ;;  %v1633_v19 = vld [vmem:[%s2610_s3 + $0x88] sm:$0xf0]  ;;  %v1355_v21 = vor.u32 %v1665_v10, %v1352_v11  ;;  %v1434_v22 = vld [vmem:[%s2610_s3 + $0x230] sm:$0xf]  ;;  %v22_v27 = vpack.c.bf16 %v21_v16, %v21_v16 }
  0x15   :  { %142 = vmatpush.bf16.msra.mxu1 %v1119_v43  ;;  %878 = vmatpush.bf16.msra.mxu2 %v1267_v63  ;;  %v1689_v23 = vld [vmem:[%s2610_s3 + $0x248] sm:$0xf0]  ;;  %v1579_v24 = vor.u32 %v1721_v12, %v1576_v13  ;;  %v1658_v25 = vld [vmem:[%s2610_s3 + $0x154] sm:$0xf]  ;;  %v1324_v26 = vld [vmem:[%s2610_s3 + $0x16c] sm:$0xf0]  ;;  %v1211_v30 = vor.u32 %v1633_v19, %v1210_v18 }
  0x16   :  { %v1714_v28 = vld [vmem:[%s2610_s3 + $0x314] sm:$0xf]  ;;  %v1548_v29 = vld [vmem:[%s2610_s3 + $0x32c] sm:$0xf0]  ;;  %v1435_v31 = vor.u32 %v1689_v23, %v1434_v22  ;;  %v1182_v32 = vld [vmem:[%s2610_s3 + $0x38] sm:$0xf]  ;;  %v1327_v34 = vor.u32 %v1658_v25, %v1324_v26 }
  0x17   :  { %891 = vmatpush.bf16.msra.mxu3 %v1491_v2  ;;  %v1626_v33 = vld [vmem:[%s2610_s3 + $0x50] sm:$0xf0]  ;;  %v1406_v35 = vld [vmem:[%s2610_s3 + $0x1f8] sm:$0xf]  ;;  %v1551_v37 = vor.u32 %v1714_v28, %v1548_v29  ;;  %v1651_v38 = vld [vmem:[%s2610_s3 + $0x11c] sm:$0xf] }
  0x18   :  { %130 = vmatpush.bf16.msra.mxu0 %v1107_v51  ;;  %v1682_v36 = vld [vmem:[%s2610_s3 + $0x210] sm:$0xf0]  ;;  %v1296_v39 = vld [vmem:[%s2610_s3 + $0x134] sm:$0xf0]  ;;  %v1707_v40 = vld [vmem:[%s2610_s3 + $0x2dc] sm:$0xf]  ;;  %v1183_v42 = vor.u32 %v1626_v33, %v1182_v32 }
  0x19   :  { %143 = vmatpush.bf16.msra.mxu1 %v1111_v56  ;;  %879 = vmatpush.bf16.msra.mxu2 %v1239_v14  ;;  %v1520_v41 = vld [vmem:[%s2610_s3 + $0x2f4] sm:$0xf0]  ;;  %v1644_v43 = vld [vmem:[%s2610_s3 + $0xe4] sm:$0xf]  ;;  %v1407_v44 = vor.u32 %v1682_v36, %v1406_v35  ;;  %v1154_v45 = vld [vmem:[%s2610_s3] sm:$0xf]  ;;  %v1299_v48 = vor.u32 %v1651_v38, %v1296_v39 }
  0x1a   :  { %v1619_v46 = vld [vmem:[%s2610_s3 + $0x18] sm:$0xf0]  ;;  %v1378_v47 = vld [vmem:[%s2610_s3 + $0x1c0] sm:$0xf]  ;;  %v1358_v50 = vld [vmem:[%s2610_s3 + $0x190] sm:$0xf]  ;;  %v1523_v52 = vor.u32 %v1707_v40, %v1520_v41 }
  0x1b   :  { %892 = vmatpush.bf16.msra.mxu3 %v1463_v17  ;;  %v1675_v49 = vld [vmem:[%s2610_s3 + $0x1d8] sm:$0xf0]  ;;  %v1669_v51 = vld [vmem:[%s2610_s3 + $0x1a8] sm:$0xf0]  ;;  %v1268_v53 = vld [vmem:[%s2610_s3 + $0xfc] sm:$0xf0]  ;;  %v1155_v58 = vor.u32 %v1619_v46, %v1154_v45 }
  0x1c   :  { %131 = vmatpush.bf16.msra.mxu0 %v1099_v0  ;;  %v1582_v54 = vld [vmem:[%s2610_s3 + $0x350] sm:$0xf]  ;;  %v1725_v55 = vld [vmem:[%s2610_s3 + $0x368] sm:$0xf0]  ;;  %v1700_v56 = vld [vmem:[%s2610_s3 + $0x2a4] sm:$0xf]  ;;  %v1379_v59 = vor.u32 %v1675_v49, %v1378_v47  ;;  %v1359_v60 = vor.u32 %v1669_v51, %v1358_v50  ;;  %v1271_v61 = vor.u32 %v1644_v43, %v1268_v53 }
  0x1d   :  { %144 = vmatpush.bf16.msra.mxu1 %v1103_v5  ;;  %880 = vmatpush.bf16.msra.mxu2 %v1211_v30  ;;  %v1492_v57 = vld [vmem:[%s2610_s3 + $0x2bc] sm:$0xf0]  ;;  %v1637_v62 = vld [vmem:[%s2610_s3 + $0xac] sm:$0xf]  ;;  %v1583_v63 = vor.u32 %v1725_v55, %v1582_v54  ;;  %v1330_v0 = vld [vmem:[%s2610_s3 + $0x158] sm:$0xf] }
  0x1e   :  { %v1662_v1 = vld [vmem:[%s2610_s3 + $0x170] sm:$0xf0]  ;;  %v1495_v2 = vor.u32 %v1700_v56, %v1492_v57  ;;  %v1240_v3 = vld [vmem:[%s2610_s3 + $0xc4] sm:$0xf0]  ;;  %v1554_v4 = vld [vmem:[%s2610_s3 + $0x318] sm:$0xf] }
  0x1f   :  { %893 = vmatpush.bf16.msra.mxu3 %v1435_v31  ;;  %v1718_v5 = vld [vmem:[%s2610_s3 + $0x330] sm:$0xf0]  ;;  %v1693_v6 = vld [vmem:[%s2610_s3 + $0x26c] sm:$0xf]  ;;  %v1464_v7 = vld [vmem:[%s2610_s3 + $0x284] sm:$0xf0]  ;;  %v1331_v9 = vor.u32 %v1662_v1, %v1330_v0  ;;  %v1243_v10 = vor.u32 %v1637_v62, %v1240_v3 }
  0x20   :  { %132 = vmatpush.bf16.msra.mxu0 %v1091_v15  ;;  %v1630_v8 = vld [vmem:[%s2610_s3 + $0x74] sm:$0xf]  ;;  %v1212_v11 = vld [vmem:[%s2610_s3 + $0x8c] sm:$0xf0]  ;;  %v1555_v12 = vor.u32 %v1718_v5, %v1554_v4  ;;  %v1302_v13 = vld [vmem:[%s2610_s3 + $0x120] sm:$0xf]  ;;  %v1467_v15 = vor.u32 %v1693_v6, %v1464_v7 }
  0x21   :  { %145 = vmatpush.bf16.msra.mxu1 %v1095_v20  ;;  %881 = vmatpush.bf16.msra.mxu2 %v1183_v42  ;;  %v1655_v14 = vld [vmem:[%s2610_s3 + $0x138] sm:$0xf0]  ;;  %v1526_v16 = vld [vmem:[%s2610_s3 + $0x2e0] sm:$0xf] }
  0x22   :  { %v1711_v17 = vld [vmem:[%s2610_s3 + $0x2f8] sm:$0xf0] }
  0x23   :  { %133 = vmatmul.bf16.vlgmr.msra.gmra.mxu0 %v22_v27  ;;  %894 = vmatpush.bf16.msra.mxu3 %v1407_v44 }
  0x24   :  { %901 = vmatpush.bf16.msrb.mxu0 %v1355_v21  ;;  %146 = vmatmul.bf16.vlgmr.msra.gmra.mxu1 %v22_v27 }
  0x25   :  { %914 = vmatpush.bf16.msrb.mxu1 %v1579_v24  ;;  %882 = vmatpush.bf16.msra.mxu2 %v1155_v58 }
  0x27   :  { %895 = vmatpush.bf16.msra.mxu3 %v1379_v59 }
  0x28   :  { %902 = vmatpush.bf16.msrb.mxu0 %v1327_v34 }
  0x29   :  { %915 = vmatpush.bf16.msrb.mxu1 %v1551_v37  ;;  %927 = vmatpush.bf16.msrb.mxu2 %v1359_v60 }
  0x2b   :  { %940 = vmatpush.bf16.msrb.mxu3 %v1583_v63 }
  0x2c   :  { %903 = vmatpush.bf16.msrb.mxu0 %v1299_v48 }
  0x2d   :  { %916 = vmatpush.bf16.msrb.mxu1 %v1523_v52 }
  0x30   :  { %904 = vmatpush.bf16.msrb.mxu0 %v1271_v61 }
  0x31   :  { %917 = vmatpush.bf16.msrb.mxu1 %v1495_v2 }
  0x32   :  { %10 = vsyncpa [#allocation3], 0  ;;  %v1686_v18 = vld [vmem:[%s2610_s3 + $0x234] sm:$0xf]  ;;  %v1436_v19 = vld [vmem:[%s2610_s3 + $0x24c] sm:$0xf0]  ;;  %928 = vmatpush.bf16.msrb.mxu2 %v1331_v9  ;;  %v1303_v20 = vor.u32 %v1655_v14, %v1302_v13  ;;  %v1215_v21 = vor.u32 %v1630_v8, %v1212_v11  ;;  %941 = vmatpush.bf16.msrb.mxu3 %v1555_v12  ;;  %v1527_v23 = vor.u32 %v1711_v17, %v1526_v16 }
  0x33   :  { %v1623_v22 = vld [vmem:[%s2610_s3 + $0x3c] sm:$0xf]  ;;  %v1274_v24 = vld [vmem:[%s2610_s3 + $0xe8] sm:$0xf]  ;;  %v1648_v25 = vld [vmem:[%s2610_s3 + $0x100] sm:$0xf0]  ;;  %v1439_v26 = vor.u32 %v1686_v18, %v1436_v19 }
  0x34   :  { %905 = vmatpush.bf16.msrb.mxu0 %v1243_v10  ;;  %v1184_v27 = vld [vmem:[%s2610_s3 + $0x54] sm:$0xf0]  ;;  %v1498_v28 = vld [vmem:[%s2610_s3 + $0x2a8] sm:$0xf]  ;;  %v1704_v29 = vld [vmem:[%s2610_s3 + $0x2c0] sm:$0xf0]  ;;  %v1275_v33 = vor.u32 %v1648_v25, %v1274_v24 }
  0x35   :  { %918 = vmatpush.bf16.msrb.mxu1 %v1467_v15  ;;  %v1679_v30 = vld [vmem:[%s2610_s3 + $0x1fc] sm:$0xf]  ;;  %v1408_v31 = vld [vmem:[%s2610_s3 + $0x214] sm:$0xf0]  ;;  %v1616_v32 = vld [vmem:[%s2610_s3 + $0x4] sm:$0xf]  ;;  %v1187_v34 = vor.u32 %v1623_v22, %v1184_v27  ;;  %v1499_v36 = vor.u32 %v1704_v29, %v1498_v28 }
  0x36   :  { %929 = vmatpush.bf16.msrb.mxu2 %v1303_v20  ;;  %v1156_v35 = vld [vmem:[%s2610_s3 + $0x1c] sm:$0xf0]  ;;  %942 = vmatpush.bf16.msrb.mxu3 %v1527_v23  ;;  %v1246_v37 = vld [vmem:[%s2610_s3 + $0xb0] sm:$0xf]  ;;  %v1641_v38 = vld [vmem:[%s2610_s3 + $0xc8] sm:$0xf0]  ;;  %v1411_v39 = vor.u32 %v1679_v30, %v1408_v31 }
  0x37   :  { %v1672_v40 = vld [vmem:[%s2610_s3 + $0x1c4] sm:$0xf]  ;;  %v1470_v41 = vld [vmem:[%s2610_s3 + $0x270] sm:$0xf]  ;;  %v1697_v42 = vld [vmem:[%s2610_s3 + $0x288] sm:$0xf0]  ;;  %v1247_v48 = vor.u32 %v1641_v38, %v1246_v37  ;;  %v1159_v49 = vor.u32 %v1616_v32, %v1156_v35 }
  0x38   :  { %906 = vmatpush.bf16.msrb.mxu0 %v1215_v21  ;;  %v1380_v43 = vld [vmem:[%s2610_s3 + $0x1dc] sm:$0xf0]  ;;  %v1666_v44 = vld [vmem:[%s2610_s3 + $0x194] sm:$0xf]  ;;  %v1360_v45 = vld [vmem:[%s2610_s3 + $0x1ac] sm:$0xf0]  ;;  %v1471_v50 = vor.u32 %v1697_v42, %v1470_v41 }
  0x39   :  { %919 = vmatpush.bf16.msrb.mxu1 %v1439_v26  ;;  %v1722_v46 = vld [vmem:[%s2610_s3 + $0x354] sm:$0xf]  ;;  %v1584_v47 = vld [vmem:[%s2610_s3 + $0x36c] sm:$0xf0]  ;;  %v1218_v51 = vld [vmem:[%s2610_s3 + $0x78] sm:$0xf]  ;;  %v1383_v53 = vor.u32 %v1672_v40, %v1380_v43  ;;  %v1363_v54 = vor.u32 %v1666_v44, %v1360_v45 }
  0x3a   :  { %930 = vmatpush.bf16.msrb.mxu2 %v1275_v33  ;;  %943 = vmatpush.bf16.msrb.mxu3 %v1499_v36  ;;  %v1634_v52 = vld [vmem:[%s2610_s3 + $0x90] sm:$0xf0]  ;;  %v1442_v55 = vld [vmem:[%s2610_s3 + $0x238] sm:$0xf]  ;;  %v1587_v57 = vor.u32 %v1722_v46, %v1584_v47  ;;  %v1659_v58 = vld [vmem:[%s2610_s3 + $0x15c] sm:$0xf] }
  0x3b   :  { %v1690_v56 = vld [vmem:[%s2610_s3 + $0x250] sm:$0xf0]  ;;  %v1332_v59 = vld [vmem:[%s2610_s3 + $0x174] sm:$0xf0]  ;;  %v1715_v60 = vld [vmem:[%s2610_s3 + $0x31c] sm:$0xf]  ;;  %v1219_v62 = vor.u32 %v1634_v52, %v1218_v51 }
  0x3c   :  { %907 = vmatpush.bf16.msrb.mxu0 %v1187_v34  ;;  %v1556_v61 = vld [vmem:[%s2610_s3 + $0x334] sm:$0xf0]  ;;  %v1443_v63 = vor.u32 %v1690_v56, %v1442_v55  ;;  %v1335_v0 = vor.u32 %v1659_v58, %v1332_v59  ;;  %v1652_v2 = vld [vmem:[%s2610_s3 + $0x124] sm:$0xf]  ;;  %v1304_v3 = vld [vmem:[%s2610_s3 + $0x13c] sm:$0xf0] }
  0x3d   :  { %920 = vmatpush.bf16.msrb.mxu1 %v1411_v39  ;;  %v1559_v1 = vor.u32 %v1715_v60, %v1556_v61  ;;  %v1708_v4 = vld [vmem:[%s2610_s3 + $0x2e4] sm:$0xf]  ;;  %v1528_v5 = vld [vmem:[%s2610_s3 + $0x2fc] sm:$0xf0]  ;;  %v1307_v6 = vor.u32 %v1652_v2, %v1304_v3  ;;  %v1645_v8 = vld [vmem:[%s2610_s3 + $0xec] sm:$0xf] }
  0x3e   :  { %931 = vmatpush.bf16.msrb.mxu2 %v1247_v48  ;;  %944 = vmatpush.bf16.msrb.mxu3 %v1471_v50  ;;  %v1531_v7 = vor.u32 %v1708_v4, %v1528_v5  ;;  %v1276_v9 = vld [vmem:[%s2610_s3 + $0x104] sm:$0xf0]  ;;  %v1701_v10 = vld [vmem:[%s2610_s3 + $0x2ac] sm:$0xf]  ;;  %v1638_v14 = vld [vmem:[%s2610_s3 + $0xb4] sm:$0xf] }
  0x3f   :  { %v1500_v11 = vld [vmem:[%s2610_s3 + $0x2c4] sm:$0xf0]  ;;  %v1279_v12 = vor.u32 %v1645_v8, %v1276_v9  ;;  %v1248_v15 = vld [vmem:[%s2610_s3 + $0xcc] sm:$0xf0]  ;;  %v1694_v16 = vld [vmem:[%s2610_s3 + $0x274] sm:$0xf] }
  0x40   :  { %908 = vmatpush.bf16.msrb.mxu0 %v1159_v49  ;;  %v1503_v13 = vor.u32 %v1701_v10, %v1500_v11  ;;  %v1472_v17 = vld [vmem:[%s2610_s3 + $0x28c] sm:$0xf0]  ;;  %v1251_v18 = vor.u32 %v1638_v14, %v1248_v15  ;;  %v1631_v20 = vld [vmem:[%s2610_s3 + $0x7c] sm:$0xf]  ;;  %v1220_v21 = vld [vmem:[%s2610_s3 + $0x94] sm:$0xf0] }
  0x41   :  { %921 = vmatpush.bf16.msrb.mxu1 %v1383_v53  ;;  %v1475_v19 = vor.u32 %v1694_v16, %v1472_v17  ;;  %v1687_v22 = vld [vmem:[%s2610_s3 + $0x23c] sm:$0xf]  ;;  %v1444_v23 = vld [vmem:[%s2610_s3 + $0x254] sm:$0xf0]  ;;  %v1223_v24 = vor.u32 %v1631_v20, %v1220_v21  ;;  %v1190_v26 = vld [vmem:[%s2610_s3 + $0x40] sm:$0xf] }
  0x42   :  { %932 = vmatpush.bf16.msrb.mxu2 %v1219_v62  ;;  %945 = vmatpush.bf16.msrb.mxu3 %v1443_v63  ;;  %v1447_v25 = vor.u32 %v1687_v22, %v1444_v23  ;;  %v1627_v27 = vld [vmem:[%s2610_s3 + $0x58] sm:$0xf0]  ;;  %v1414_v29 = vld [vmem:[%s2610_s3 + $0x200] sm:$0xf]  ;;  %v1624_v31 = vld [vmem:[%s2610_s3 + $0x44] sm:$0xf] }
  0x43   :  { %v1191_v28 = vor.u32 %v1627_v27, %v1190_v26  ;;  %v1683_v30 = vld [vmem:[%s2610_s3 + $0x218] sm:$0xf0]  ;;  %v1192_v33 = vld [vmem:[%s2610_s3 + $0x5c] sm:$0xf0]  ;;  %v1680_v34 = vld [vmem:[%s2610_s3 + $0x204] sm:$0xf] }
  0x44   :  { %953 = vmatpush.bf16.msra.mxu0 %v1363_v54  ;;  %v1415_v32 = vor.u32 %v1683_v30, %v1414_v29  ;;  %v1416_v35 = vld [vmem:[%s2610_s3 + $0x21c] sm:$0xf0]  ;;  %v1195_v36 = vor.u32 %v1624_v31, %v1192_v33  ;;  %v1162_v38 = vld [vmem:[%s2610_s3 + $0x8] sm:$0xf]  ;;  %v1620_v39 = vld [vmem:[%s2610_s3 + $0x20] sm:$0xf0] }
  0x45   :  { %966 = vmatpush.bf16.msra.mxu1 %v1587_v57  ;;  %v1419_v37 = vor.u32 %v1680_v34, %v1416_v35  ;;  %v1386_v40 = vld [vmem:[%s2610_s3 + $0x1c8] sm:$0xf]  ;;  %v1163_v41 = vor.u32 %v1620_v39, %v1162_v38  ;;  %v1676_v42 = vld [vmem:[%s2610_s3 + $0x1e0] sm:$0xf0]  ;;  %v1617_v43 = vld [vmem:[%s2610_s3 + $0xc] sm:$0xf] }
  0x46   :  { %933 = vmatpush.bf16.msrb.mxu2 %v1191_v28  ;;  %946 = vmatpush.bf16.msrb.mxu3 %v1415_v32  ;;  %v1164_v44 = vld [vmem:[%s2610_s3 + $0x24] sm:$0xf0]  ;;  %v1387_v45 = vor.u32 %v1676_v42, %v1386_v40  ;;  %v1673_v47 = vld [vmem:[%s2610_s3 + $0x1cc] sm:$0xf]  ;;  %v39_v50 = vld [vmem:[%s2609_s2] sm:$0x3] }
  0x47   :  { %v1167_v46 = vor.u32 %v1617_v43, %v1164_v44  ;;  %v1388_v48 = vld [vmem:[%s2610_s3 + $0x1e4] sm:$0xf0]  ;;  %v41_v51 = vperm.slane %v39_v50, 0  ;;  %v42_v52 = vperm.slane %v39_v50, 1  ;;  %v1366_v56 = vld [vmem:[%s2610_s3 + $0x198] sm:$0xf] }
  0x48   :  { %954 = vmatpush.bf16.msra.mxu0 %v1335_v0  ;;  %v1391_v49 = vor.u32 %v1673_v47, %v1388_v48  ;;  %v1670_v57 = vld [vmem:[%s2610_s3 + $0x1b0] sm:$0xf0]  ;;  %v1590_v58 = vld [vmem:[%s2610_s3 + $0x358] sm:$0xf]  ;;  %v1667_v61 = vld [vmem:[%s2610_s3 + $0x19c] sm:$0xf] }
  0x49   :  { %967 = vmatpush.bf16.msra.mxu1 %v1559_v1  ;;  %v1726_v60 = vld [vmem:[%s2610_s3 + $0x370] sm:$0xf0]  ;;  %v1368_v62 = vld [vmem:[%s2610_s3 + $0x1b4] sm:$0xf0]  ;;  %v1723_v0 = vld [vmem:[%s2610_s3 + $0x35c] sm:$0xf]  ;;  %v1367_v4 = vor.u32 %v1670_v57, %v1366_v56 }
  0x4a   :  { %934 = vmatpush.bf16.msrb.mxu2 %v1163_v41  ;;  %947 = vmatpush.bf16.msrb.mxu3 %v1387_v45  ;;  %v1592_v1 = vld [vmem:[%s2610_s3 + $0x374] sm:$0xf0]  ;;  %v1591_v5 = vor.u32 %v1726_v60, %v1590_v58  ;;  %v1371_v9 = vor.u32 %v1667_v61, %v1368_v62  ;;  %v1562_v11 = vld [vmem:[%s2610_s3 + $0x320] sm:$0xf]  ;;  %v1716_v15 = vld [vmem:[%s2610_s3 + $0x324] sm:$0xf] }
  0x4b   :  { %v1595_v10 = vor.u32 %v1723_v0, %v1592_v1  ;;  %v1340_v14 = vld [vmem:[%s2610_s3 + $0x17c] sm:$0xf0]  ;;  %v1310_v21 = vld [vmem:[%s2610_s3 + $0x128] sm:$0xf]  ;;  %v1656_v22 = vld [vmem:[%s2610_s3 + $0x140] sm:$0xf0] }
  0x4c   :  { %955 = vmatpush.bf16.msra.mxu0 %v1307_v6  ;;  %v1338_v6 = vld [vmem:[%s2610_s3 + $0x160] sm:$0xf]  ;;  %v1712_v26 = vld [vmem:[%s2610_s3 + $0x300] sm:$0xf0]  ;;  %v1653_v27 = vld [vmem:[%s2610_s3 + $0x12c] sm:$0xf]  ;;  %v1311_v31 = vor.u32 %v1656_v22, %v1310_v21 }
  0x4d   :  { %968 = vmatpush.bf16.msra.mxu1 %v1531_v7  ;;  %v1663_v7 = vld [vmem:[%s2610_s3 + $0x178] sm:$0xf0]  ;;  %v1564_v16 = vld [vmem:[%s2610_s3 + $0x33c] sm:$0xf0]  ;;  %v1312_v28 = vld [vmem:[%s2610_s3 + $0x144] sm:$0xf0] }
  0x4e   :  { %v1709_v29 = vld [vmem:[%s2610_s3 + $0x2ec] sm:$0xf]  ;;  %v1536_v30 = vld [vmem:[%s2610_s3 + $0x304] sm:$0xf0]  ;;  %v1282_v33 = vld [vmem:[%s2610_s3 + $0xf0] sm:$0xf]  ;;  %v1315_v35 = vor.u32 %v1653_v27, %v1312_v28 }
  0x4f   :  { %v1649_v34 = vld [vmem:[%s2610_s3 + $0x108] sm:$0xf0]  ;;  %v1646_v39 = vld [vmem:[%s2610_s3 + $0xf4] sm:$0xf]  ;;  %v1284_v40 = vld [vmem:[%s2610_s3 + $0x10c] sm:$0xf0] }
  0x50   :  { %956 = vmatpush.bf16.msra.mxu0 %v1279_v12  ;;  %v1719_v12 = vld [vmem:[%s2610_s3 + $0x338] sm:$0xf0]  ;;  %v1705_v38 = vld [vmem:[%s2610_s3 + $0x2c8] sm:$0xf0]  ;;  %v1702_v41 = vld [vmem:[%s2610_s3 + $0x2b4] sm:$0xf]  ;;  %v1283_v43 = vor.u32 %v1649_v34, %v1282_v33  ;;  %v1287_v47 = vor.u32 %v1646_v39, %v1284_v40 }
  0x51   :  { %969 = vmatpush.bf16.msra.mxu1 %v1503_v13  ;;  %v1660_v13 = vld [vmem:[%s2610_s3 + $0x164] sm:$0xf]  ;;  %v1563_v20 = vor.u32 %v1719_v12, %v1562_v11  ;;  %v1508_v42 = vld [vmem:[%s2610_s3 + $0x2cc] sm:$0xf0]  ;;  %v1254_v45 = vld [vmem:[%s2610_s3 + $0xb8] sm:$0xf] }
  0x52   :  { %v1343_v23 = vor.u32 %v1660_v13, %v1340_v14  ;;  %v1511_v48 = vor.u32 %v1702_v41, %v1508_v42  ;;  %v1698_v50 = vld [vmem:[%s2610_s3 + $0x290] sm:$0xf0]  ;;  %v1226_v57 = vld [vmem:[%s2610_s3 + $0x80] sm:$0xf]  ;;  %v1635_v58 = vld [vmem:[%s2610_s3 + $0x98] sm:$0xf0] }
  0x53   :  { %v1450_v61 = vld [vmem:[%s2610_s3 + $0x240] sm:$0xf]  ;;  %v1691_v62 = vld [vmem:[%s2610_s3 + $0x258] sm:$0xf0]  ;;  %v1688_v1 = vld [vmem:[%s2610_s3 + $0x244] sm:$0xf] }
  0x54   :  { %957 = vmatpush.bf16.msra.mxu0 %v1251_v18  ;;  %v1228_v0 = vld [vmem:[%s2610_s3 + $0x9c] sm:$0xf0]  ;;  %v1422_v11 = vld [vmem:[%s2610_s3 + $0x208] sm:$0xf]  ;;  %v1684_v12 = vld [vmem:[%s2610_s3 + $0x220] sm:$0xf0] }
  0x55   :  { %970 = vmatpush.bf16.msra.mxu1 %v1475_v19  ;;  %v1339_v19 = vor.u32 %v1663_v7, %v1338_v6  ;;  %v1198_v6 = vld [vmem:[%s2610_s3 + $0x48] sm:$0xf]  ;;  %v1628_v7 = vld [vmem:[%s2610_s3 + $0x60] sm:$0xf0]  ;;  %v1625_v13 = vld [vmem:[%s2610_s3 + $0x4c] sm:$0xf] }
  0x56   :  { %v1200_v14 = vld [vmem:[%s2610_s3 + $0x64] sm:$0xf0]  ;;  %v1394_v21 = vld [vmem:[%s2610_s3 + $0x1d0] sm:$0xf]  ;;  %v1674_v27 = vld [vmem:[%s2610_s3 + $0x1d4] sm:$0xf] }
  0x57   :  { %v1203_v22 = vor.u32 %v1625_v13, %v1200_v14  ;;  %v1396_v28 = vld [vmem:[%s2610_s3 + $0x1ec] sm:$0xf0]  ;;  %v1346_v39 = vld [vmem:[%s2610_s3 + $0x168] sm:$0xf]  ;;  %v1664_v40 = vld [vmem:[%s2610_s3 + $0x180] sm:$0xf0] }
  0x58   :  { %958 = vmatpush.bf16.msra.mxu0 %v1223_v24  ;;  %v1567_v24 = vor.u32 %v1716_v15, %v1564_v16  ;;  %v1681_v15 = vld [vmem:[%s2610_s3 + $0x20c] sm:$0xf]  ;;  %v1424_v16 = vld [vmem:[%s2610_s3 + $0x224] sm:$0xf0]  ;;  %v1720_v42 = vld [vmem:[%s2610_s3 + $0x340] sm:$0xf0] }
  0x59   :  { %971 = vmatpush.bf16.msra.mxu1 %v1447_v25  ;;  %v1534_v25 = vld [vmem:[%s2610_s3 + $0x2e8] sm:$0xf]  ;;  %v1178_v13 = vld [vmem:[%s2610_s3 + $0x18] sm:$0xf]  ;;  %v1622_v14 = vld [vmem:[%s2610_s3 + $0x30] sm:$0xf0] }
  0x5a   :  { %v1535_v32 = vor.u32 %v1712_v26, %v1534_v25  ;;  %v1618_v25 = vld [vmem:[%s2610_s3 + $0x14] sm:$0xf]  ;;  %v1172_v26 = vld [vmem:[%s2610_s3 + $0x2c] sm:$0xf0]  ;;  %v1570_v41 = vld [vmem:[%s2610_s3 + $0x328] sm:$0xf] }
  0x5b   :  { %s1079_s26 = sshll.u32 %s2612_s5, 4  ;;  %vm1070_vm0 = vcmask 130048   ;;  %s1080_s26 = int_to_ptr.hbm [resolvable:$true] %s1079_s26 }
  0x5c   :  { %959 = vmatpush.bf16.msra.mxu0 %v1195_v36  ;;  %v1539_v36 = vor.u32 %v1709_v29, %v1536_v30  ;;  %v1374_v29 = vld [vmem:[%s2610_s3 + $0x1a0] sm:$0xf]  ;;  %v1671_v30 = vld [vmem:[%s2610_s3 + $0x1b8] sm:$0xf0] }
  0x5d   :  { %972 = vmatpush.bf16.msra.mxu1 %v1419_v37  ;;  %v1506_v37 = vld [vmem:[%s2610_s3 + $0x2b0] sm:$0xf] }
  0x5e   :  { %v1507_v44 = vor.u32 %v1705_v38, %v1506_v37  ;;  %v1375_v37 = vor.u32 %v1671_v30, %v1374_v29 }
  0x60   :  { %960 = vmatpush.bf16.msra.mxu0 %v1167_v46  ;;  %v1642_v46 = vld [vmem:[%s2610_s3 + $0xd0] sm:$0xf0] }
  0x61   :  { %973 = vmatpush.bf16.msra.mxu1 %v1391_v49  ;;  %v1478_v49 = vld [vmem:[%s2610_s3 + $0x278] sm:$0xf] }
  0x62   :  { %v1479_v56 = vor.u32 %v1698_v50, %v1478_v49 }
  0xa0   :  { %v134_v53 = vpop.f32.mrf.mxu0 }
  0xa1   :  { %v135_v54 = vadd.f32 %v134_v53, %v41_v51  ;;  %v147_v55 = vpop.f32.mrf.mxu1  ;;  %v1639_v51 = vld [vmem:[%s2610_s3 + $0xbc] sm:$0xf] }
  0xa2   :  { %v148_v59 = vadd.f32 %v147_v55, %v42_v52  ;;  %v1256_v52 = vld [vmem:[%s2610_s3 + $0xd4] sm:$0xf0]  ;;  %v1695_v53 = vld [vmem:[%s2610_s3 + $0x27c] sm:$0xf]  ;;  %v1255_v55 = vor.u32 %v1642_v46, %v1254_v45  ;;  %v1318_v45 = vld [vmem:[%s2610_s3 + $0x130] sm:$0xf] }
  0xa3   :  { %v151_v63 = vmax.f32 %v135_v54, 0.0  ;;  %v1480_v54 = vld [vmem:[%s2610_s3 + $0x294] sm:$0xf0]  ;;  %v1657_v46 = vld [vmem:[%s2610_s3 + $0x148] sm:$0xf0] }
  0xa4   :  { %v152_v2 = vmax.f32 %v148_v59, 0.0  ;;  %v1259_v59 = vor.u32 %v1639_v51, %v1256_v52  ;;  %v1483_v60 = vor.u32 %v1695_v53, %v1480_v54  ;;  %v1319_v49 = vor.u32 %v1657_v46, %v1318_v45  ;;  %v1290_v51 = vld [vmem:[%s2610_s3 + $0xf8] sm:$0xf]  ;;  %v1650_v52 = vld [vmem:[%s2610_s3 + $0x110] sm:$0xf0] }
  0xa5   :  { %v2310_v3 = vpack.c.bf16 %v151_v63, %v151_v63  ;;  %v1632_v63 = vld [vmem:[%s2610_s3 + $0x84] sm:$0xf]  ;;  %v1514_v53 = vld [vmem:[%s2610_s3 + $0x2b8] sm:$0xf]  ;;  %v1706_v54 = vld [vmem:[%s2610_s3 + $0x2d0] sm:$0xf0] }
  0xa6   :  { %v2318_v8 = vpack.c.bf16 %v152_v2, %v152_v2  ;;  %v1452_v2 = vld [vmem:[%s2610_s3 + $0x25c] sm:$0xf0] }
  0xa7   :  { %883 = vmatmul.bf16.vlgmr.msra.gmra.mxu2 %v2310_v3  ;;  %909 = vmatmul.bf16.vlgmr.msrb.gmra.mxu0 %v2310_v3 }
  0xa8   :  { %896 = vmatmul.bf16.vlgmr.msra.gmra.mxu3 %v2318_v8  ;;  %922 = vmatmul.bf16.vlgmr.msrb.gmra.mxu1 %v2318_v8  ;;  %v136_v17 = vpop.f32.mrf.mxu0 }
  0xa9   :  { %979 = vmatpush.bf16.msra.mxu2 %v1367_v4  ;;  %992 = vmatpush.bf16.msra.mxu3 %v1591_v5  ;;  %v149_v18 = vpop.f32.mrf.mxu1  ;;  %v1227_v4 = vor.u32 %v1635_v58, %v1226_v57  ;;  %v1451_v5 = vor.u32 %v1691_v62, %v1450_v61  ;;  %v1199_v17 = vor.u32 %v1628_v7, %v1198_v6  ;;  %v1262_v57 = vld [vmem:[%s2610_s3 + $0xc0] sm:$0xf]  ;;  %v1643_v58 = vld [vmem:[%s2610_s3 + $0xd8] sm:$0xf0]  ;;  %v1206_v6 = vld [vmem:[%s2610_s3 + $0x50] sm:$0xf] }
  0xaa   :  { %1005 = vmatpush.bf16.msrb.mxu0 %v1371_v9  ;;  %1018 = vmatpush.bf16.msrb.mxu1 %v1595_v10  ;;  %v1231_v9 = vor.u32 %v1632_v63, %v1228_v0  ;;  %v1455_v10 = vor.u32 %v1688_v1, %v1452_v2  ;;  %v1423_v18 = vor.u32 %v1684_v12, %v1422_v11  ;;  %v1234_v63 = vld [vmem:[%s2610_s3 + $0x88] sm:$0xf]  ;;  %v1636_v0 = vld [vmem:[%s2610_s3 + $0xa0] sm:$0xf0]  ;;  %v1629_v7 = vld [vmem:[%s2610_s3 + $0x68] sm:$0xf0] }
  0xab   :  { %v1263_v61 = vor.u32 %v1643_v58, %v1262_v57  ;;  %v1458_v1 = vld [vmem:[%s2610_s3 + $0x248] sm:$0xf]  ;;  %v1692_v2 = vld [vmem:[%s2610_s3 + $0x260] sm:$0xf0]  ;;  %v1207_v11 = vor.u32 %v1629_v7, %v1206_v6 }
  0xad   :  { %980 = vmatpush.bf16.msra.mxu2 %v1339_v19  ;;  %993 = vmatpush.bf16.msra.mxu3 %v1563_v20  ;;  %v1170_v19 = vld [vmem:[%s2610_s3 + $0x10] sm:$0xf]  ;;  %v1621_v20 = vld [vmem:[%s2610_s3 + $0x28] sm:$0xf0] }
  0xae   :  { %1006 = vmatpush.bf16.msrb.mxu0 %v1343_v23  ;;  %1019 = vmatpush.bf16.msrb.mxu1 %v1567_v24  ;;  %v1427_v23 = vor.u32 %v1681_v15, %v1424_v16  ;;  %v1677_v24 = vld [vmem:[%s2610_s3 + $0x1e8] sm:$0xf0]  ;;  %v1171_v33 = vor.u32 %v1621_v20, %v1170_v19  ;;  %v1402_v15 = vld [vmem:[%s2610_s3 + $0x1d8] sm:$0xf]  ;;  %v1678_v16 = vld [vmem:[%s2610_s3 + $0x1f0] sm:$0xf0] }
  0xaf   :  { %v1395_v34 = vor.u32 %v1677_v24, %v1394_v21  ;;  %v2595_v19 = vld [vmem:[%s2611_s4] sm:$0x7f] }
  0xb0   :  { %v286_v20 = vperm.slane %v2595_v19, 1 }
  0xb1   :  { %981 = vmatpush.bf16.msra.mxu2 %v1311_v31  ;;  %994 = vmatpush.bf16.msra.mxu3 %v1535_v32  ;;  %v1598_v31 = vld [vmem:[%s2610_s3 + $0x360] sm:$0xf]  ;;  %v1727_v32 = vld [vmem:[%s2610_s3 + $0x378] sm:$0xf0] }
  0xb2   :  { %1007 = vmatpush.bf16.msrb.mxu0 %v1315_v35  ;;  %1020 = vmatpush.bf16.msrb.mxu1 %v1539_v36  ;;  %v1175_v35 = vor.u32 %v1618_v25, %v1172_v26  ;;  %v1399_v36 = vor.u32 %v1674_v27, %v1396_v28  ;;  %v1599_v38 = vor.u32 %v1727_v32, %v1598_v31  ;;  %v285_v25 = vperm.slane %v2595_v19, 0 }
  0xb3   :  { %v288_v31 = vperm.slane %v2595_v19, 3 }
  0xb5   :  { %982 = vmatpush.bf16.msra.mxu2 %v1283_v43  ;;  %995 = vmatpush.bf16.msra.mxu3 %v1507_v44  ;;  %v1347_v43 = vor.u32 %v1664_v40, %v1346_v39  ;;  %v1571_v44 = vor.u32 %v1720_v42, %v1570_v41  ;;  %v287_v39 = vperm.slane %v2595_v19, 2 }
  0xb6   :  { %1008 = vmatpush.bf16.msrb.mxu0 %v1287_v47  ;;  %1021 = vmatpush.bf16.msrb.mxu1 %v1511_v48  ;;  %v1542_v47 = vld [vmem:[%s2610_s3 + $0x2f0] sm:$0xf]  ;;  %v1713_v48 = vld [vmem:[%s2610_s3 + $0x308] sm:$0xf0] }
  0xb7   :  { %935 = vmatmul.bf16.vlgmr.msrb.gmra.mxu2 %v2310_v3  ;;  %961 = vmatmul.bf16.vlgmr.msra.gmra.mxu0 %v2310_v3  ;;  %v1543_v50 = vor.u32 %v1713_v48, %v1542_v47 }
  0xb8   :  { %948 = vmatmul.bf16.vlgmr.msrb.gmra.mxu3 %v2318_v8  ;;  %974 = vmatmul.bf16.vlgmr.msra.gmra.mxu1 %v2318_v8 }
  0xb9   :  { %983 = vmatpush.bf16.msra.mxu2 %v1255_v55  ;;  %996 = vmatpush.bf16.msra.mxu3 %v1479_v56  ;;  %v1291_v55 = vor.u32 %v1650_v52, %v1290_v51  ;;  %v1515_v56 = vor.u32 %v1706_v54, %v1514_v53  ;;  %v289_v54 = vperm.slane %v2595_v19, 4 }
  0xba   :  { %1009 = vmatpush.bf16.msrb.mxu0 %v1259_v59  ;;  %1022 = vmatpush.bf16.msrb.mxu1 %v1483_v60  ;;  %v1486_v59 = vld [vmem:[%s2610_s3 + $0x280] sm:$0xf]  ;;  %v1699_v60 = vld [vmem:[%s2610_s3 + $0x298] sm:$0xf0] }
  0xbb   :  { %v1487_v62 = vor.u32 %v1699_v60, %v1486_v59 }
  0xbd   :  { %984 = vmatpush.bf16.msra.mxu2 %v1227_v4  ;;  %997 = vmatpush.bf16.msra.mxu3 %v1451_v5  ;;  %v1235_v4 = vor.u32 %v1636_v0, %v1234_v63  ;;  %v1459_v5 = vor.u32 %v1692_v2, %v1458_v1  ;;  %v291_v2 = vperm.slane %v2595_v19, 6 }
  0xbe   :  { %1010 = vmatpush.bf16.msrb.mxu0 %v1231_v9  ;;  %1023 = vmatpush.bf16.msrb.mxu1 %v1455_v10  ;;  %v1430_v9 = vld [vmem:[%s2610_s3 + $0x210] sm:$0xf]  ;;  %v1685_v10 = vld [vmem:[%s2610_s3 + $0x228] sm:$0xf0]  ;;  %s1769_s3 = smov [#allocation2]  }
  0xbf   :  { %v1431_v12 = vor.u32 %v1685_v10, %v1430_v9  ;;  %s1077_s4 = sshll.u32 %s1769_s3, 4  ;;  %s1078_s4 = int_to_ptr.vmem [resolvable:$true] %s1077_s4 }
  0xc1   :  { %985 = vmatpush.bf16.msra.mxu2 %v1199_v17  ;;  %998 = vmatpush.bf16.msra.mxu3 %v1423_v18  ;;  %v1179_v17 = vor.u32 %v1622_v14, %v1178_v13  ;;  %v1403_v18 = vor.u32 %v1678_v16, %v1402_v15 }
  0xc2   :  { %1011 = vmatpush.bf16.msrb.mxu0 %v1203_v22  ;;  %1024 = vmatpush.bf16.msrb.mxu1 %v1427_v23 }
  0xc5   :  { %986 = vmatpush.bf16.msra.mxu2 %v1171_v33  ;;  %999 = vmatpush.bf16.msra.mxu3 %v1395_v34 }
  0xc6   :  { %1012 = vmatpush.bf16.msrb.mxu0 %v1175_v35  ;;  %1025 = vmatpush.bf16.msrb.mxu1 %v1399_v36 }
  0xc8   :  { %987 = vmatmul.bf16.vlgmr.msra.gmra.mxu2 %v2310_v3  ;;  %1000 = vmatmul.bf16.vlgmr.msra.gmra.mxu3 %v2318_v8 }
  0xc9   :  { %1031 = vmatpush.bf16.msrb.mxu2 %v1375_v37  ;;  %1044 = vmatpush.bf16.msrb.mxu3 %v1599_v38 }
  0xca   :  { %1013 = vmatmul.bf16.vlgmr.msrb.gmra.mxu0 %v2310_v3  ;;  %1026 = vmatmul.bf16.vlgmr.msrb.gmra.mxu1 %v2318_v8 }
  0xcd   :  { %1032 = vmatpush.bf16.msrb.mxu2 %v1347_v43  ;;  %1045 = vmatpush.bf16.msrb.mxu3 %v1571_v44 }
  0xd1   :  { %1033 = vmatpush.bf16.msrb.mxu2 %v1319_v49  ;;  %1046 = vmatpush.bf16.msrb.mxu3 %v1543_v50  ;;  %v290_v49 = vperm.slane %v2595_v19, 5 }
  0xd5   :  { %1034 = vmatpush.bf16.msrb.mxu2 %v1291_v55  ;;  %1047 = vmatpush.bf16.msrb.mxu3 %v1515_v56 }
  0xd9   :  { %1035 = vmatpush.bf16.msrb.mxu2 %v1263_v61  ;;  %1048 = vmatpush.bf16.msrb.mxu3 %v1487_v62 }
  0xdd   :  { %1036 = vmatpush.bf16.msrb.mxu2 %v1235_v4  ;;  %1049 = vmatpush.bf16.msrb.mxu3 %v1459_v5 }
  0xe1   :  { %1037 = vmatpush.bf16.msrb.mxu2 %v1207_v11  ;;  %1050 = vmatpush.bf16.msrb.mxu3 %v1431_v12 }
  0xe5   :  { %1038 = vmatpush.bf16.msrb.mxu2 %v1179_v17  ;;  %1051 = vmatpush.bf16.msrb.mxu3 %v1403_v18 }
  0xe8   :  { %1039 = vmatmul.bf16.vlgmr.msrb.gmra.mxu2 %v2310_v3  ;;  %1052 = vmatmul.bf16.vlgmr.msrb.gmra.mxu3 %v2318_v8 }
 0x124   :  { %v910_v21 = vpop.f32.mrf.mxu0 }
 0x125   :  { %v911_v22 = vadd.f32 %v910_v21, %v286_v20  ;;  %v923_v23 = vpop.f32.mrf.mxu1 }
 0x127   :  { %v924_v24 = vadd.f32 %v923_v23, %v911_v22 }
 0x129   :  { %1729 = vtanh.f32 %v924_v24 }
 0x12a   :  { %v884_v26 = vpop.f32.mrf.mxu2 }
 0x12b   :  { %v885_v27 = vadd.f32 %v884_v26, %v285_v25  ;;  %v897_v28 = vpop.f32.mrf.mxu3 }
 0x12c   :  { %v912_v3 = vpop.f32.mrf.mxu0 }
 0x12d   :  { %v898_v29 = vadd.f32 %v897_v28, %v885_v27  ;;  %v925_v8 = vpop.f32.mrf.mxu1 }
 0x12f   :  { %v1730_v30 = vpop.eup %1729  ;;  %1731 = vtanh.f32 %v898_v29 }
 0x130   :  { %1065 = vst [vmem:[#allocation2 + $0x8] sm:$0xff] %v1730_v30 }
 0x132   :  { %v886_v32 = vpop.f32.mrf.mxu2 }
 0x133   :  { %v899_v33 = vpop.f32.mrf.mxu3 }
 0x134   :  { %v962_v34 = vpop.f32.mrf.mxu0 }
 0x135   :  { %v1732_v35 = vpop.eup %1731  ;;  %v963_v36 = vadd.f32 %v962_v34, %v288_v31  ;;  %v975_v37 = vpop.f32.mrf.mxu1 }
 0x136   :  { %1064 = vst [vmem:[#allocation2] sm:$0xff] %v1732_v35 }
 0x137   :  { %v976_v38 = vadd.f32 %v975_v37, %v963_v36 }
 0x139   :  { %1733 = vtanh.f32 %v976_v38 }
 0x13a   :  { %v936_v40 = vpop.f32.mrf.mxu2 }
 0x13b   :  { %v937_v41 = vadd.f32 %v936_v40, %v287_v39  ;;  %v949_v42 = vpop.f32.mrf.mxu3 }
 0x13c   :  { %v964_v43 = vpop.f32.mrf.mxu0 }
 0x13d   :  { %v950_v44 = vadd.f32 %v949_v42, %v937_v41  ;;  %v977_v45 = vpop.f32.mrf.mxu1 }
 0x13f   :  { %v1734_v46 = vpop.eup %1733  ;;  %1735 = vtanh.f32 %v950_v44 }
 0x140   :  { %1067 = vst [vmem:[#allocation2 + $0x18] sm:$0xff] %v1734_v46 }
 0x142   :  { %v938_v47 = vpop.f32.mrf.mxu2 }
 0x143   :  { %v951_v48 = vpop.f32.mrf.mxu3 }
 0x145   :  { %v1736_v50 = vpop.eup %1735 }
 0x146   :  { %1066 = vst [vmem:[#allocation2 + $0x10] sm:$0xff] %v1736_v50 }
 0x147   :  { %v1014_v51 = vpop.f32.mrf.mxu0  ;;  %v1027_v52 = vpop.f32.mrf.mxu1 }
 0x148   :  { %v1015_v53 = vadd.f32 %v1014_v51, %v290_v49 }
 0x14a   :  { %v1028_v55 = vadd.f32 %v1027_v52, %v1015_v53 }
 0x14b   :  { %v988_v56 = vpop.f32.mrf.mxu2  ;;  %v1001_v57 = vpop.f32.mrf.mxu3 }
 0x14c   :  { %1737 = vtanh.f32 %v1028_v55  ;;  %v989_v58 = vadd.f32 %v988_v56, %v289_v54 }
 0x14e   :  { %v1002_v59 = vadd.f32 %v1001_v57, %v989_v58 }
 0x14f   :  { %v1016_v60 = vpop.f32.mrf.mxu0  ;;  %v1029_v61 = vpop.f32.mrf.mxu1 }
 0x150   :  { %1739 = vtanh.f32 %v1002_v59 }
 0x152   :  { %v1738_v62 = vpop.eup %1737 }
 0x153   :  { %1069 = vst [vmem:[#allocation2 + $0x28] sm:$0xff] %v1738_v62  ;;  %v990_v63 = vpop.f32.mrf.mxu2  ;;  %v1003_v0 = vpop.f32.mrf.mxu3 }
 0x156   :  { %v1740_v1 = vpop.eup %1739 }
 0x157   :  { %1068 = vst [vmem:[#allocation2 + $0x20] sm:$0xff] %v1740_v1 }
 0x16b   :  { %v1040_v4 = vpop.f32.mrf.mxu2  ;;  %v1053_v5 = vpop.f32.mrf.mxu3 }
 0x16c   :  { %v1041_v6 = vadd.f32 %v1040_v4, %v291_v2 }
 0x16e   :  { %v1054_v7 = vadd.f32 %v1053_v5, %v1041_v6 }
 0x170   :  { %1741 = vtanh.f32 %v1054_v7 }
 0x173   :  { %v1042_v9 = vpop.f32.mrf.mxu2  ;;  %v1055_v10 = vpop.f32.mrf.mxu3 }
 0x176   :  { %v1742_v11 = vpop.eup %1741 }
 0x177   :  { %1071 = vst.msk [vmem:[#allocation2 + $0x30] sm:$0xff] %vm1070_vm0, %v1742_v11 }
 0x178   :  { %1082 = dma.vmem_to_hbm [thread:$0]  %s1078_s4, 896, %s1080_s26, [#allocation3]  }
 0x179   :  { %1767 = dma.done.wait [#allocation3], 896  }
 0x17a   :  { %1768 = vsyncadd [#allocation3], 4294966400 }
 0x17b   :  { %1087 = vsyncpa [#allocation3], 1 }

</bundles_post_ra>
